<compile_context>
chip_gen: v5e
topology: v5e:2x2
jax: 0.10.0
libtpu: 0.0.40
codegen_flags: <defaults>
</compile_context>

<pallas_src>
import functools

import jax
import jax.numpy as jnp
from jax.experimental import pallas as pl
from jax.experimental.pallas import tpu as pltpu


def dice_ce_kernel(logits_ref, target_ref, dice_ref, ce_ref, *, hw_valid, needs_mask):
    p = pl.program_id(1)

    @pl.when(p == 0)
    def _init():
        dice_ref[...] = jnp.zeros_like(dice_ref)
        ce_ref[...] = jnp.zeros_like(ce_ref)

    logits = logits_ref[...].astype(jnp.float32)           # (C, St, 128)
    target = target_ref[...]                                # (1, St, 128) int32
    C, St, L = logits.shape

    # Numerically stable softmax / log-softmax over the class (major) axis:
    # pure cross-slab VALU ops, no XLU needed.
    m = jnp.max(logits, axis=0, keepdims=True)              # (1, St, L)
    z = logits - m
    ez = jnp.exp(z)
    se = jnp.sum(ez, axis=0, keepdims=True)                 # (1, St, L)
    inv = pl.reciprocal(se, approx=True)                    # EUP vrcp (free slot)
    inv = inv * (2.0 - se * inv)                            # one Newton step -> ~f32 exact
    probs = ez * inv
    log_se = jnp.log(se)

    # One-hot of the target along the class axis.  Padded pixels carry target == C,
    # so every class row compares False there (one-hot is all-zero).
    classes = jax.lax.broadcasted_iota(jnp.int32, (C, St, L), 0)
    onehot = (classes == target).astype(jnp.float32)        # (C, St, L)

    # Per-pixel cross-entropy: logsumexp(logits) - logits[target] = log_se - z[target]
    ce_pp = log_se - jnp.sum(onehot * z, axis=0, keepdims=True)   # (1, St, L)

    if needs_mask:
        s_iota = jax.lax.broadcasted_iota(jnp.int32, (1, St, L), 1)
        l_iota = jax.lax.broadcasted_iota(jnp.int32, (1, St, L), 2)
        pix = (p * St + s_iota) * L + l_iota                # pixel index within the image
        valid = (pix < hw_valid).astype(jnp.float32)
        ce_pp = ce_pp * valid
        probs_for_sum = probs * valid
    else:
        probs_for_sum = probs

    # Per-tile sublane reductions -> tiny per-image accumulators resident across p.
    dice_ref[0] += jnp.sum(probs * onehot, axis=1)          # intersection   (C, 128)
    dice_ref[1] += jnp.sum(probs_for_sum, axis=1)           # sum of probs   (C, 128)
    dice_ref[2] += jnp.sum(onehot, axis=1)                  # sum of one-hot (C, 128)
    ce_ref[...] += jnp.sum(ce_pp, axis=1)                   # CE partial     (1, 128)


def _choose_sublane_tile(S, C, max_sublanes):
    """Largest multiple of 8 that divides S, capped so one f32 (C, tile, 128)
    temporary stays around ~1 MiB (keeps in-kernel intermediates small)."""
    cap = max(8, ((1 << 20) // (C * 128 * 4)) // 8 * 8)
    t = min(S, max_sublanes, cap)
    t = max(8, (t // 8) * 8)
    while S % t:
        t -= 8
    return t


def dice_loss_plus_cross_entropy(logits_nchw, target_nhw, *, max_sublanes_per_tile=2048):
    """Forward pass of DiceLossPlusCrossEntrophy (weight=None path)."""
    N, C, H, W = logits_nchw.shape
    HW = H * W
    HW_pad = -(-HW // 1024) * 1024           # multiple of 8 sublanes * 128 lanes
    S = HW_pad // 128
    needs_mask = HW_pad != HW

    # Free reshapes; padding (only when HW % 1024 != 0) keeps the lane-dense tiling.
    logits = logits_nchw.reshape(N, C, HW)
    target = target_nhw.reshape(N, HW).astype(jnp.int32)
    if needs_mask:
        pad = HW_pad - HW
        logits = jnp.pad(logits, ((0, 0), (0, 0), (0, pad)))
        target = jnp.pad(target, ((0, 0), (0, pad)), constant_values=C)  # out-of-range class
    logits = logits.reshape(N, C, S, 128)
    target = target.reshape(N, 1, S, 128)

    stile = _choose_sublane_tile(S, C, max_sublanes_per_tile)
    n_tiles = S // stile

    # Explicit scoped-VMEM sizing: double-buffered inputs + headroom for in-kernel
    # f32 temporaries + margin.  Portable to v5e (16 MiB default) and v7x (64 MiB phys).
    itemsize = jnp.dtype(logits_nchw.dtype).itemsize
    f32_plane = C * stile * 128 * 4
    in_step = (C * itemsize + 4) * stile * 128
    vmem_limit = int(2 * in_step + 8 * f32_plane + (4 << 20))
    vmem_limit = min(max(vmem_limit, 8 << 20), 96 << 20)

    kernel = functools.partial(dice_ce_kernel, hw_valid=HW, needs_mask=needs_mask)

    dice_stats, ce_part = pl.pallas_call(
        kernel,
        out_shape=(
            jax.ShapeDtypeStruct((N, 3, C, 128), jnp.float32),   # per-image dice partials
            jax.ShapeDtypeStruct((N, 1, 128), jnp.float32),      # per-image CE partials
        ),
        grid=(N, n_tiles),
        in_specs=[
            pl.BlockSpec((None, C, stile, 128), lambda n, p: (n, 0, p, 0)),
            pl.BlockSpec((None, 1, stile, 128), lambda n, p: (n, 0, p, 0)),
        ],
        out_specs=(
            pl.BlockSpec((None, 3, C, 128), lambda n, p: (n, 0, 0, 0)),
            pl.BlockSpec((None, 1, 128), lambda n, p: (n, 0, 0)),
        ),
        compiler_params=pltpu.CompilerParams(
            dimension_semantics=("parallel", "arbitrary"),
            vmem_limit_bytes=vmem_limit),
    )(logits, target)

    # Final combine (a few hundred flops) in plain JAX.
    inter = jnp.sum(dice_stats[:, 0], axis=(0, 2))          # (C,)
    isum = jnp.sum(dice_stats[:, 1], axis=(0, 2))           # (C,)
    tsum = jnp.sum(dice_stats[:, 2], axis=(0, 2))           # (C,)
    ce = jnp.sum(ce_part) / float(N * HW)                   # mean over real pixels
    smooth = 1.0
    dice_c = 1.0 - (2.0 * inter + smooth) / (isum + tsum + smooth)
    dice = jnp.sum(dice_c) / float(C)                       # weight = 1/C per class
    return 0.5 * ce + dice


def _reference(logits_nchw, target_nhw):
    # Plain-JAX reference mirroring the PyTorch module (weight=None).
    N, C, H, W = logits_nchw.shape
    logits_f32 = logits_nchw.astype(jnp.float32)
    logp = jax.nn.log_softmax(logits_f32, axis=1)
    onehot = jax.nn.one_hot(target_nhw, C, axis=1, dtype=jnp.float32)  # (N,C,H,W)
    ce = -jnp.mean(jnp.sum(onehot * logp, axis=1))
    probs = jax.nn.softmax(logits_f32, axis=1)
    smooth = 1.0
    inter = jnp.sum(probs * onehot, axis=(0, 2, 3))
    isum = jnp.sum(probs, axis=(0, 2, 3))
    tsum = jnp.sum(onehot, axis=(0, 2, 3))
    dice = jnp.sum((1.0 / C) * (1.0 - (2.0 * inter + smooth) / (isum + tsum + smooth)))
    return 0.5 * ce + dice


if __name__ == "__main__":
    key = jax.random.PRNGKey(0)
    k1, k2, k3, k4, k5, k6 = jax.random.split(key, 6)

    # Test 1: small spatial size -> pads HW 256 -> 1024, exercises the mask path.
    N, C, H, W = 2, 4, 16, 16
    logits = jax.random.normal(k1, (N, C, H, W), dtype=jnp.float32)
    target = jax.random.randint(k2, (N, H, W), 0, C, dtype=jnp.int32)
    ref = jax.block_until_ready(_reference(logits, target))
    loss = jax.block_until_ready(dice_loss_plus_cross_entropy(logits, target))
    assert jnp.isfinite(loss), "loss is not finite"
    assert jnp.allclose(loss, ref, rtol=1e-4, atol=1e-4), (loss, ref)

    # Test 2: bf16 logits, HW % 1024 == 0 (no mask), multiple pixel tiles per image
    # to exercise the cross-tile accumulation path and the in-kernel f32 cast.
    N2, C2, H2, W2 = 2, 4, 64, 64
    logits2 = jax.random.normal(k3, (N2, C2, H2, W2), dtype=jnp.bfloat16)
    target2 = jax.random.randint(k4, (N2, H2, W2), 0, C2, dtype=jnp.int32)
    ref2 = jax.block_until_ready(_reference(logits2, target2))
    loss2 = jax.block_until_ready(
        dice_loss_plus_cross_entropy(logits2, target2, max_sublanes_per_tile=16))
    assert jnp.isfinite(loss2), "loss2 is not finite"
    assert jnp.allclose(loss2, ref2, rtol=1e-4, atol=1e-4), (loss2, ref2)

    # Test 3: odd class count and spatial size not divisible by 128 (heavy padding/mask).
    N3, C3, H3, W3 = 1, 3, 10, 10
    logits3 = jax.random.normal(k5, (N3, C3, H3, W3), dtype=jnp.float32)
    target3 = jax.random.randint(k6, (N3, H3, W3), 0, C3, dtype=jnp.int32)
    ref3 = jax.block_until_ready(_reference(logits3, target3))
    loss3 = jax.block_until_ready(dice_loss_plus_cross_entropy(logits3, target3))
    assert jnp.isfinite(loss3), "loss3 is not finite"
    assert jnp.allclose(loss3, ref3, rtol=1e-4, atol=1e-4), (loss3, ref3)

    print("KERNEL_OK")
</pallas_src>

<mosaic_0001>
module attributes {stable_mosaic.version = 11 : i64} {
  func.func @dice_ce_kernel(%arg0: i32, %arg1: i32, %arg2: memref<1x4x8x128xf32, #tpu.memory_space<vmem>>, %arg3: memref<1x1x8x128xi32, #tpu.memory_space<vmem>>, %arg4: memref<1x3x4x128xf32, #tpu.memory_space<vmem>>, %arg5: memref<1x1x128xf32, #tpu.memory_space<vmem>>) attributes {dimension_semantics = [#tpu.dimension_semantics<parallel>, #tpu.dimension_semantics<arbitrary>], iteration_bounds = array<i64: 2, 1>, scalar_prefetch = 0 : i64, scratch_operands = 0 : i64, tpu.core_type = #tpu.core_type<tc>, window_params = [{transform_indices = @transform_0, window_bounds = array<i64: 1, 4, 8, 128>}, {transform_indices = @transform_1, window_bounds = array<i64: 1, 1, 8, 128>}, {transform_indices = @transform_2, window_bounds = array<i64: 1, 3, 4, 128>}, {transform_indices = @transform_3, window_bounds = array<i64: 1, 1, 128>}]} {
    %c0_i32 = arith.constant 0 : i32
    %0 = arith.cmpi eq, %arg1, %c0_i32 : i32
    %1 = arith.extui %0 : i1 to i32
    %c0_i32_0 = arith.constant 0 : i32
    %2 = arith.cmpi ne, %1, %c0_i32_0 : i32
    scf.if %2 {
      %cst_43 = arith.constant 0.000000e+00 : f32
      %75 = vector.broadcast %cst_43 : f32 to vector<3x4x128xf32>
      %c0_44 = arith.constant 0 : index
      %c0_45 = arith.constant 0 : index
      %c0_46 = arith.constant 0 : index
      %c0_47 = arith.constant 0 : index
      %76 = vector.load %arg4[%c0_44, %c0_45, %c0_46, %c0_47] : memref<1x3x4x128xf32, #tpu.memory_space<vmem>>, vector<1x3x4x128xf32>
      %77 = vector.shape_cast %76 : vector<1x3x4x128xf32> to vector<3x4x128xf32>
      %78 = vector.shape_cast %75 : vector<3x4x128xf32> to vector<1x3x4x128xf32>
      tpu.vector_store %arg4[%c0_44, %c0_45, %c0_46, %c0_47], %78 {strides = array<i32>} : memref<1x3x4x128xf32, #tpu.memory_space<vmem>>, vector<1x3x4x128xf32>,
      %cst_48 = arith.constant 0.000000e+00 : f32
      %79 = vector.broadcast %cst_48 : f32 to vector<1x128xf32>
      %c0_49 = arith.constant 0 : index
      %c0_50 = arith.constant 0 : index
      %c0_51 = arith.constant 0 : index
      %80 = vector.load %arg5[%c0_49, %c0_50, %c0_51] : memref<1x1x128xf32, #tpu.memory_space<vmem>>, vector<1x1x128xf32>
      %81 = vector.shape_cast %80 : vector<1x1x128xf32> to vector<1x128xf32>
      %82 = vector.shape_cast %79 : vector<1x128xf32> to vector<1x1x128xf32>
      tpu.vector_store %arg5[%c0_49, %c0_50, %c0_51], %82 {strides = array<i32>} : memref<1x1x128xf32, #tpu.memory_space<vmem>>, vector<1x1x128xf32>,
    } else {
    }
    %c0 = arith.constant 0 : index
    %c0_1 = arith.constant 0 : index
    %c0_2 = arith.constant 0 : index
    %c0_3 = arith.constant 0 : index
    %3 = vector.load %arg2[%c0, %c0_1, %c0_2, %c0_3] : memref<1x4x8x128xf32, #tpu.memory_space<vmem>>, vector<1x4x8x128xf32>
    %4 = vector.shape_cast %3 : vector<1x4x8x128xf32> to vector<4x8x128xf32>
    %c0_4 = arith.constant 0 : index
    %c0_5 = arith.constant 0 : index
    %c0_6 = arith.constant 0 : index
    %c0_7 = arith.constant 0 : index
    %5 = vector.load %arg3[%c0_4, %c0_5, %c0_6, %c0_7] : memref<1x1x8x128xi32, #tpu.memory_space<vmem>>, vector<1x1x8x128xi32>
    %6 = vector.shape_cast %5 : vector<1x1x8x128xi32> to vector<1x8x128xi32>
    %cst = arith.constant dense<0xFF800000> : vector<8x128xf32>
    %7 = vector.multi_reduction <maximumf>, %4, %cst [0] : vector<4x8x128xf32> to vector<8x128xf32>
    %8 = vector.shape_cast %7 : vector<8x128xf32> to vector<1x8x128xf32>
    %9 = vector.broadcast %8 : vector<1x8x128xf32> to vector<4x8x128xf32>
    %10 = arith.subf %4, %9 : vector<4x8x128xf32>
    %11 = math.exp %10 : vector<4x8x128xf32>
    %cst_8 = arith.constant dense<0.000000e+00> : vector<8x128xf32>
    %12 = vector.multi_reduction <add>, %11, %cst_8 [0] : vector<4x8x128xf32> to vector<8x128xf32>
    %13 = vector.shape_cast %12 : vector<8x128xf32> to vector<1x8x128xf32>
    %14 = tpu.reciprocal %13 {approx = true} : vector<1x8x128xf32> -> vector<1x8x128xf32>
    %15 = arith.mulf %13, %14 : vector<1x8x128xf32>
    %cst_9 = arith.constant 2.000000e+00 : f32
    %16 = vector.broadcast %cst_9 : f32 to vector<1x8x128xf32>
    %17 = arith.subf %16, %15 : vector<1x8x128xf32>
    %18 = arith.mulf %14, %17 : vector<1x8x128xf32>
    %19 = vector.broadcast %18 : vector<1x8x128xf32> to vector<4x8x128xf32>
    %20 = arith.mulf %11, %19 : vector<4x8x128xf32>
    %21 = math.log %13 : vector<1x8x128xf32>
    %22 = tpu.iota {dimensions = array<i32: 0>} : vector<4x8x128xi32>
    %23 = vector.broadcast %6 : vector<1x8x128xi32> to vector<4x8x128xi32>
    %24 = arith.cmpi eq, %22, %23 : vector<4x8x128xi32>
    %25 = arith.extui %24 : vector<4x8x128xi1> to vector<4x8x128xi32>
    %26 = arith.sitofp %25 : vector<4x8x128xi32> to vector<4x8x128xf32>
    %27 = arith.mulf %26, %10 : vector<4x8x128xf32>
    %cst_10 = arith.constant dense<0.000000e+00> : vector<8x128xf32>
    %28 = vector.multi_reduction <add>, %27, %cst_10 [0] : vector<4x8x128xf32> to vector<8x128xf32>
    %29 = vector.shape_cast %28 : vector<8x128xf32> to vector<1x8x128xf32>
    %30 = arith.subf %21, %29 : vector<1x8x128xf32>
    %31 = tpu.iota {dimensions = array<i32: 1>} : vector<1x8x128xi32>
    %32 = tpu.iota {dimensions = array<i32: 2>} : vector<1x8x128xi32>
    %c8_i32 = arith.constant 8 : i32
    %33 = arith.muli %arg1, %c8_i32 : i32
    %34 = vector.broadcast %33 : i32 to vector<1x8x128xi32>
    %35 = arith.addi %34, %31 : vector<1x8x128xi32>
    %c128_i32 = arith.constant 128 : i32
    %36 = vector.broadcast %c128_i32 : i32 to vector<1x8x128xi32>
    %37 = arith.muli %35, %36 : vector<1x8x128xi32>
    %38 = arith.addi %37, %32 : vector<1x8x128xi32>
    %c256_i32 = arith.constant 256 : i32
    %39 = vector.broadcast %c256_i32 : i32 to vector<1x8x128xi32>
    %40 = arith.cmpi slt, %38, %39 : vector<1x8x128xi32>
    %41 = arith.extui %40 : vector<1x8x128xi1> to vector<1x8x128xi32>
    %42 = arith.sitofp %41 : vector<1x8x128xi32> to vector<1x8x128xf32>
    %43 = arith.mulf %30, %42 : vector<1x8x128xf32>
    %44 = vector.broadcast %42 : vector<1x8x128xf32> to vector<4x8x128xf32>
    %45 = arith.mulf %20, %44 : vector<4x8x128xf32>
    %c0_11 = arith.constant 0 : index
    %c0_12 = arith.constant 0 : index
    %c0_13 = arith.constant 0 : index
    %c0_14 = arith.constant 0 : index
    %46 = vector.load %arg4[%c0_11, %c0_12, %c0_13, %c0_14] : memref<1x3x4x128xf32, #tpu.memory_space<vmem>>, vector<1x1x4x128xf32>
    %47 = vector.shape_cast %46 : vector<1x1x4x128xf32> to vector<4x128xf32>
    %48 = arith.mulf %20, %26 : vector<4x8x128xf32>
    %cst_15 = arith.constant dense<0.000000e+00> : vector<4x128xf32>
    %49 = vector.multi_reduction <add>, %48, %cst_15 [1] : vector<4x8x128xf32> to vector<4x128xf32>
    %50 = arith.addf %47, %49 : vector<4x128xf32>
    %c0_16 = arith.constant 0 : index
    %c0_17 = arith.constant 0 : index
    %c0_18 = arith.constant 0 : index
    %c0_19 = arith.constant 0 : index
    %51 = vector.load %arg4[%c0_16, %c0_17, %c0_18, %c0_19] : memref<1x3x4x128xf32, #tpu.memory_space<vmem>>, vector<1x1x4x128xf32>
    %52 = vector.shape_cast %51 : vector<1x1x4x128xf32> to vector<4x128xf32>
    %53 = vector.shape_cast %50 : vector<4x128xf32> to vector<1x1x4x128xf32>
    tpu.vector_store %arg4[%c0_16, %c0_17, %c0_18, %c0_19], %53 {strides = array<i32>} : memref<1x3x4x128xf32, #tpu.memory_space<vmem>>, vector<1x1x4x128xf32>,
    %c0_20 = arith.constant 0 : index
    %c1 = arith.constant 1 : index
    %c0_21 = arith.constant 0 : index
    %c0_22 = arith.constant 0 : index
    %54 = vector.load %arg4[%c0_20, %c1, %c0_21, %c0_22] : memref<1x3x4x128xf32, #tpu.memory_space<vmem>>, vector<1x1x4x128xf32>
    %55 = vector.shape_cast %54 : vector<1x1x4x128xf32> to vector<4x128xf32>
    %cst_23 = arith.constant dense<0.000000e+00> : vector<4x128xf32>
    %56 = vector.multi_reduction <add>, %45, %cst_23 [1] : vector<4x8x128xf32> to vector<4x128xf32>
    %57 = arith.addf %55, %56 : vector<4x128xf32>
    %c0_24 = arith.constant 0 : index
    %c1_25 = arith.constant 1 : index
    %c0_26 = arith.constant 0 : index
    %c0_27 = arith.constant 0 : index
    %58 = vector.load %arg4[%c0_24, %c1_25, %c0_26, %c0_27] : memref<1x3x4x128xf32, #tpu.memory_space<vmem>>, vector<1x1x4x128xf32>
    %59 = vector.shape_cast %58 : vector<1x1x4x128xf32> to vector<4x128xf32>
    %60 = vector.shape_cast %57 : vector<4x128xf32> to vector<1x1x4x128xf32>
    tpu.vector_store %arg4[%c0_24, %c1_25, %c0_26, %c0_27], %60 {strides = array<i32>} : memref<1x3x4x128xf32, #tpu.memory_space<vmem>>, vector<1x1x4x128xf32>,
    %c0_28 = arith.constant 0 : index
    %c2 = arith.constant 2 : index
    %c0_29 = arith.constant 0 : index
    %c0_30 = arith.constant 0 : index
    %61 = vector.load %arg4[%c0_28, %c2, %c0_29, %c0_30] : memref<1x3x4x128xf32, #tpu.memory_space<vmem>>, vector<1x1x4x128xf32>
    %62 = vector.shape_cast %61 : vector<1x1x4x128xf32> to vector<4x128xf32>
    %cst_31 = arith.constant dense<0.000000e+00> : vector<4x128xf32>
    %63 = vector.multi_reduction <add>, %26, %cst_31 [1] : vector<4x8x128xf32> to vector<4x128xf32>
    %64 = arith.addf %62, %63 : vector<4x128xf32>
    %c0_32 = arith.constant 0 : index
    %c2_33 = arith.constant 2 : index
    %c0_34 = arith.constant 0 : index
    %c0_35 = arith.constant 0 : index
    %65 = vector.load %arg4[%c0_32, %c2_33, %c0_34, %c0_35] : memref<1x3x4x128xf32, #tpu.memory_space<vmem>>, vector<1x1x4x128xf32>
    %66 = vector.shape_cast %65 : vector<1x1x4x128xf32> to vector<4x128xf32>
    %67 = vector.shape_cast %64 : vector<4x128xf32> to vector<1x1x4x128xf32>
    tpu.vector_store %arg4[%c0_32, %c2_33, %c0_34, %c0_35], %67 {strides = array<i32>} : memref<1x3x4x128xf32, #tpu.memory_space<vmem>>, vector<1x1x4x128xf32>,
    %c0_36 = arith.constant 0 : index
    %c0_37 = arith.constant 0 : index
    %c0_38 = arith.constant 0 : index
    %68 = vector.load %arg5[%c0_36, %c0_37, %c0_38] : memref<1x1x128xf32, #tpu.memory_space<vmem>>, vector<1x1x128xf32>
    %69 = vector.shape_cast %68 : vector<1x1x128xf32> to vector<1x128xf32>
    %cst_39 = arith.constant dense<0.000000e+00> : vector<1x128xf32>
    %70 = vector.multi_reduction <add>, %43, %cst_39 [1] : vector<1x8x128xf32> to vector<1x128xf32>
    %71 = arith.addf %69, %70 : vector<1x128xf32>
    %c0_40 = arith.constant 0 : index
    %c0_41 = arith.constant 0 : index
    %c0_42 = arith.constant 0 : index
    %72 = vector.load %arg5[%c0_40, %c0_41, %c0_42] : memref<1x1x128xf32, #tpu.memory_space<vmem>>, vector<1x1x128xf32>
    %73 = vector.shape_cast %72 : vector<1x1x128xf32> to vector<1x128xf32>
    %74 = vector.shape_cast %71 : vector<1x128xf32> to vector<1x1x128xf32>
    tpu.vector_store %arg5[%c0_40, %c0_41, %c0_42], %74 {strides = array<i32>} : memref<1x1x128xf32, #tpu.memory_space<vmem>>, vector<1x1x128xf32>,
    return
  }
  func.func @transform_0(%arg0: i32, %arg1: i32) -> (i32, i32, i32, i32) {
    %c0_i32 = arith.constant 0 : i32
    %c0_i32_0 = arith.constant 0 : i32
    %c0_i32_1 = arith.constant 0 : i32
    return %arg0, %c0_i32, %arg1, %c0_i32_0 : i32, i32, i32, i32
  }
  func.func @transform_1(%arg0: i32, %arg1: i32) -> (i32, i32, i32, i32) {
    %c0_i32 = arith.constant 0 : i32
    %c0_i32_0 = arith.constant 0 : i32
    %c0_i32_1 = arith.constant 0 : i32
    return %arg0, %c0_i32, %arg1, %c0_i32_0 : i32, i32, i32, i32
  }
  func.func @transform_2(%arg0: i32, %arg1: i32) -> (i32, i32, i32, i32) {
    %c0_i32 = arith.constant 0 : i32
    %c0_i32_0 = arith.constant 0 : i32
    %c0_i32_1 = arith.constant 0 : i32
    %c0_i32_2 = arith.constant 0 : i32
    return %arg0, %c0_i32, %c0_i32_0, %c0_i32_1 : i32, i32, i32, i32
  }
  func.func @transform_3(%arg0: i32, %arg1: i32) -> (i32, i32, i32) {
    %c0_i32 = arith.constant 0 : i32
    %c0_i32_0 = arith.constant 0 : i32
    %c0_i32_1 = arith.constant 0 : i32
    return %arg0, %c0_i32, %c0_i32_0 : i32, i32, i32
  }
}

</mosaic_0001>

<bundles_post_ra>
// kernel: tpu_custom_call.1
= control target key start
LH: loop header
LB: loop body
LE: loop exit
PB: predicated region body
PF: predicated region fallthrough
CT: control target
= control target key end

     0   :  { %9 = vsyncpa [#allocation3], 0  ;;  %s1177_s0 = inlined_call_operand.hbm [shape: f32[2,4,8,128], index: 0, kind: input, shape index: {}]   ;;  %s1178_s1 = inlined_call_operand.hbm [shape: s32[2,1,8,128], index: 1, kind: input, shape index: {}]   ;;  %s1179_s2 = inlined_call_operand.hbm [shape: f32[2,3,4,128], index: 2, kind: output, shape index: {0}]   ;;  %s1180_s3 = inlined_call_operand.hbm [shape: f32[2,1,128], index: 3, kind: output, shape index: {1}]  }
   0x1   :  { %11 = vsyncpa [#allocation3 + $0x1], 0 }
   0x2   :  { %12 = vsyncpa [#allocation6], 0 }
   0x3   :  { %14 = vsyncpa [#allocation6 + $0x1], 0 }
   0x4   :  { %15 = vsyncpa [#allocation4], 0 }
   0x5   :  { %17 = vsyncpa [#allocation4 + $0x1], 0 }
   0x6   :  { %18 = vsyncpa [#allocation9], 0 }
   0x7   :  { %20 = vsyncpa [#allocation9 + $0x1], 0  ;;  %s948_s12 = smov 0   ;;  %s950_s13 = smov 0  }
   0x8   :  { %s952_s14 = smov 0   ;;  %s954_s15 = smov 0  }
   0x9   :  { %s956_s16 = smov 0   ;;  %s958_s17 = smov 0  }
   0xa LB: > { %s627_s18 = sadd.s32 4294967295, %s921_s17   ;;  %s628_s19 = sadd.s32 4294967294, %s921_s17   ;;  %s921_s17 = sphi %s958_s17, %s26_s17   ;;  %s917_s16 = sphi %s956_s16, %s1190_s16   ;;  %s913_s15 = sphi %s954_s15, %s1189_s15   ;;  %s909_s14 = sphi %s952_s14, %s1188_s14   ;;  %s905_s13 = sphi %s950_s13, %s1187_s13   ;;  %s901_s12 = sphi %s948_s12, %s1186_s12  }
   0xb   : > { %s38_s20 = sadd.s32 1, %s917_s16  ;;  %s47_s21 = sadd.s32 1, %s909_s14 }
   0xc   : > { %p40_p0 = scmp.ge.s32.totalorder %s38_s20, 2  ;;  %p54_p1 = scmp.ne.s32.totalorder %s909_s14, %s905_s13 }
   0xd   : > { %p55_p2 = scmp.eq.s32.totalorder %s921_s17, 0  ;;  %p60_p3 = scmp.ne.s32.totalorder %s905_s13, %s901_s12 }
   0xe   : > { %s1192_s20 = smov (%p40_p0, %s38_s20), 0  ;;  %p61_p5 = scmp.eq.s32.totalorder %s627_s18, 0 }
   0xf   : > { %p989_p4 = por %p55_p2, %p54_p1  ;;  %s42_s23 = ssub.s32 %s917_s16, %s1192_s20 }
  0x10   : > { %p112_p6 = scmp.eq.s32.totalorder %s627_s18, 1  ;;  %p45_p7 = scmp.eq.s32.totalorder %s42_s23, 0 }
  0x11   : > { %p995_p8 = por %p61_p5, %p60_p3  ;;  %p118_p10 = scmp.eq.s32.totalorder %s628_s19, 1 }
  0x12   : > { %p999_p9 = por %p112_p6, %p54_p1  ;;  %p630_p12 = scmp.ge.s32.totalorder %s921_s17, 2 }
  0x13   : > { %s1004_s26 = scalar_select %p45_p7, %s909_s14, %s47_s21  }
  0x14   : > { %p1006_p11 = por %p118_p10, %p60_p3  ;;  %p676_p13 = scmp.lt.s32.totalorder %s921_s17, 2 }
  0x15   : > { %s164_s28 = sand.u32 1, %s909_s14   ;;  %s651_s30 = sshll.u32 %s917_s16, 5 }
  0x16   : > { %s631_s29 = sshll.u32 %s164_s28, 5  ;;  %s174_s6 = scalar_lea.hbm %s1177_s0, %s651_s30 }
  0x17   : > { %s168_s7 = scalar_lea.vmem [#allocation2], %s631_s29  ;;  %s175_s9 = sshll.u32 %s174_s6, 4  ;;  %s176_s9 = int_to_ptr.hbm [resolvable:$true] %s175_s9 }
  0x18   : > { %s177_s8 = sshll.u32 %s168_s7, 4  ;;  %p1019_p0 = pnand %p676_p13, %p989_p4  ;;  %s178_s8 = int_to_ptr.vmem [resolvable:$true] %s177_s8 }
  0x19   : > { %p636_p1 = scmp.ge.s32.totalorder %s921_s17, 1  ;;  %s165_s11 = scalar_lea.sflag [#allocation3], %s164_s28 }
  0x1a   : > { %s923_s18 = smov 128   ;;  %s924_s19 = smov 8  }
  0x1b   : > { %665 = dma.hbm_to_vmem [thread:$0]  (!%p1019_p0), %s176_s9, 512, %s178_s8, %s165_s11, %s923_s18, %s923_s18, %s924_s19  }
  0x1c   : > { %p205_p2 = scmp.lt.s32.totalorder %s921_s17, 3  ;;  %s634_s21 = sshll.u32 %s164_s28, 3 }
  0x1d   : > { %s635_s23 = sshll.u32 %s917_s16, 3  ;;  %s191_s4 = scalar_lea.vmem [#allocation5], %s634_s21 }
  0x1e   : > { %p206_p3 = pnand %p636_p1, %p205_p2  ;;  %s196_s22 = scalar_lea.hbm %s1178_s1, %s635_s23 }
  0x1f   : > { %s200_s5 = sshll.u32 %s191_s4, 4  ;;  %s198_s6 = sshll.u32 %s196_s22, 4  ;;  %s201_s5 = int_to_ptr.vmem [resolvable:$true] %s200_s5  ;;  %s199_s6 = int_to_ptr.hbm [resolvable:$true] %s198_s6 }
  0x20   : > { %s188_s7 = scalar_lea.sflag [#allocation6], %s164_s28  ;;  %209 = sbr.rel (%p206_p3) target bundleno = 116 (0x74), region = 28 }
  0x21   : > { %668 = dma.hbm_to_vmem [thread:$0]  (!%p1019_p0), %s199_s6, 128, %s201_s5, %s188_s7  }
  0x22   : > { %s1034_s8 = sand.u32 (!%p206_p3), 1, %s905_s13  }
  0x23   : > { %s637_s9 = sshll.u32 (!%p206_p3), %s1034_s8, 5  ;;  %s212_s11 = scalar_lea.sflag (!%p206_p3), [#allocation3], %s1034_s8 }
  0x24   : > { %s215_s18 = scalar_lea.vmem (!%p206_p3), [#allocation2], %s637_s9 }
  0x25   : > { %884 = dma.done.wait (%p995_p8), %s212_s11, 512  }
  0x26   : > { %886 = vsyncadd (%p995_p8), %s212_s11, 4294966784  ;;  %s638_s28 = sshll.u32 %s1034_s8, 3  ;;  %s222_s10 = scalar_lea.sflag [#allocation6], %s1034_s8 }
  0x27   : > { %s225_s19 = scalar_lea.vmem [#allocation5], %s638_s28 }
  0x28   : > { %888 = dma.done.wait (%p995_p8), %s222_s10, 128  }
  0x29   : > { %890 = vsyncadd (%p995_p8), %s222_s10, 4294967168  ;;  %s652_s21 = smul.u32 12, %s1034_s8  ;;  %s1050_s23 = scalar_lea.vmem [#allocation8], %s1034_s8  ;;  %v925_v0 = vmov 0.0   ;;  %v266_v1 = vld [vmem:[%s215_s18] sm:$0xff]  ;;  %v267_v2 = vld [vmem:[%s215_s18 + $0x8] sm:$0xff]  ;;  %v319_v31 = vlaneseq }
  0x2a   : > { %265 = vst [vmem:[%s1050_s23] sm:$0x1] %v925_v0  ;;  %v268_v3 = vld [vmem:[%s215_s18 + $0x10] sm:$0xff]  ;;  %v269_v4 = vld [vmem:[%s215_s18 + $0x18] sm:$0xff]  ;;  %v271_v5 = vmax.f32 %v266_v1, %v267_v2  ;;  %v270_v6 = vld [vmem:[%s225_s19] sm:$0xff]  ;;  %vm369_vm4 = vcmask 1041409   ;;  %vm371_vm5 = vcmask 1042434   ;;  %s490_s11 = scalar_lea.hbm %s1180_s3, %s913_s15 }
  0x2b   : > { %s1054_s29 = scalar_lea.vmem [#allocation7], %s652_s21  ;;  %v272_v7 = vmax.f32 %v268_v3, %v269_v4  ;;  %vm299_vm0 = vcmp.eq.s32.totalorder %v270_v6, 0  ;;  %vm300_vm1 = vcmp.eq.s32.totalorder %v270_v6, 1  ;;  %vm301_vm2 = vcmp.eq.s32.totalorder %v270_v6, 2  ;;  %s653_s24 = smul.u32 12, %s913_s15 }
  0x2c   : > { %262 = vst [vmem:[%s1054_s29] sm:$0xf] %v925_v0  ;;  %vm302_vm3 = vcmp.eq.s32.totalorder %v270_v6, 3  ;;  %v1066_v17 = vsel %vm299_vm0, 1.0, %v925_v0  ;;  %v1069_v18 = vsel %vm300_vm1, 1.0, %v925_v0  ;;  %v1072_v19 = vsel %vm301_vm2, 1.0, %v925_v0  ;;  %s476_s5 = sshll.u32 %s1054_s29, 4  ;;  %s1117_s5 = int_to_ptr.vmem [resolvable:$true] %s476_s5 }
  0x2d   : > { %263 = vst [vmem:[%s1054_s29 + $0x4] sm:$0xf] %v925_v0  ;;  %v273_v8 = vmax.f32 %v271_v5, %v272_v7  ;;  %v416_v20 = vrot.slane %v1066_v17, 4  ;;  %v422_v21 = vrot.slane %v1069_v18, 4  ;;  %v1077_v22 = vsel %vm302_vm3, 1.0, %v925_v0  ;;  %s475_s4 = scalar_lea.hbm %s1179_s2, %s653_s24  ;;  %s492_s18 = sshll.u32 %s1050_s23, 4  ;;  %s493_s18 = int_to_ptr.vmem [resolvable:$true] %s492_s18 }
  0x2e   : > { %264 = vst [vmem:[%s1054_s29 + $0x8] sm:$0xf] %v925_v0  ;;  %v428_v23 = vrot.slane %v1072_v19, 4  ;;  %v434_v26 = vrot.slane %v1077_v22, 4  ;;  %v320_v47 = vshrl.u32 %v319_v31, 7  ;;  %vm373_vm6 = vcmask 1043459  }
  0x2f   : > { %v274_v9 = vsub.f32 %v266_v1, %v273_v8  ;;  %v275_v10 = vsub.f32 %v267_v2, %v273_v8  ;;  %v276_v11 = vsub.f32 %v268_v3, %v273_v8  ;;  %v1062_v12 = vsub.f32 %v269_v4, %v273_v8  ;;  %s478_s6 = sshll.u32 %s475_s4, 4  ;;  %s1127_s28 = sshll.u32 %s490_s11, 4  ;;  %s479_s6 = int_to_ptr.hbm [resolvable:$true] %s478_s6  ;;  %s495_s28 = int_to_ptr.hbm [resolvable:$true] %s1127_s28 }
  0x30   : > { %v417_v24 = vadd.f32 %v1066_v17, %v416_v20  ;;  %v423_v25 = vadd.f32 %v1069_v18, %v422_v21  ;;  %v429_v27 = vadd.f32 %v1072_v19, %v428_v23  ;;  %v435_v30 = vadd.f32 %v1077_v22, %v434_v26  ;;  %s460_s10 = scalar_lea.sflag [#allocation4], %s1034_s8  ;;  %s817_s19 = sshra.s32 %s479_s6, 4  ;;  %s818_s19 = int_to_ptr.hbm [resolvable:$true] %s817_s19 }
  0x31   : > { %v278_v13 = vmul.f32 1.442695, %v274_v9  ;;  %v280_v14 = vmul.f32 1.442695, %v275_v10  ;;  %v282_v15 = vmul.f32 1.442695, %v276_v11  ;;  %v311_v39 = vmul.f32 %v1066_v17, %v274_v9  ;;  %p824_p7 = scmp.lt.s32.totalorder %s818_s19, %s1179_s2 }
  0x32   : > { %v284_v16 = vmul.f32 1.442695, %v1062_v12  ;;  %v418_v28 = vrot.slane %v417_v24, 2  ;;  %v424_v29 = vrot.slane %v423_v25, 2  ;;  %v430_v32 = vrot.slane %v429_v27, 2  ;;  %s819_s21 = scalar_lea.hbm %s818_s19, 12 }
  0x33   : > { %731 = vpow2.f32 %v278_v13  ;;  %v436_v36 = vrot.slane %v435_v30, 2  ;;  %v312_v40 = vmul.f32 %v1069_v18, %v275_v10  ;;  %v313_v54 = vmul.f32 %v1072_v19, %v276_v11  ;;  %p820_p4 = scmp.ne.s32.totalorder %s818_s19, %s819_s21  ;;  %s823_s30 = scalar_lea.hbm %s1179_s2, 24 }
  0x34   : > { %733 = vpow2.f32 %v280_v14  ;;  %v419_v34 = vadd.f32 %v418_v28, %v417_v24  ;;  %v425_v35 = vadd.f32 %v424_v29, %v423_v25  ;;  %v431_v38 = vadd.f32 %v430_v32, %v429_v27  ;;  %p825_p8 = scmp.lt.s32.totalorder %s823_s30, %s819_s21 }
  0x35   : > { %735 = vpow2.f32 %v282_v15  ;;  %v437_v45 = vadd.f32 %v436_v36, %v435_v30  ;;  %v315_v55 = vadd.f32 %v312_v40, %v311_v39  ;;  %v322_v60 = vand.u32 127, %v319_v31  ;;  %v646_v62 = vld [vmem:[%s1054_s29 + $0x8] sm:$0xf]  ;;  %p821_p5 = pnand %p820_p4, %p999_p9 }
  0x36   : > { %737 = vpow2.f32 %v284_v16  ;;  %v420_v43 = vrot.slane %v419_v34, 1  ;;  %v426_v44 = vrot.slane %v425_v35, 1  ;;  %v432_v48 = vrot.slane %v431_v38, 1  ;;  %p826_p10 = por %p825_p8, %p824_p7 }
  0x37   : > { %v438_v52 = vrot.slane %v437_v45, 1  ;;  %v326_v61 = vmul.u32 128, %v320_v47  ;;  %v314_v2 = vmul.f32 %v1077_v22, %v1062_v12  ;;  %v316_v3 = vadd.f32 %v315_v55, %v313_v54  ;;  %p822_p6 = pneg %p821_p5 }
  0x38   : > { %v421_v50 = vadd.f32 %v420_v43, %v419_v34  ;;  %v427_v51 = vadd.f32 %v426_v44, %v425_v35  ;;  %v433_v53 = vadd.f32 %v432_v48, %v431_v38 }
  0x39   : > { %v732_v33 = vpop.eup %731  ;;  %v439_v57 = vadd.f32 %v438_v52, %v437_v45  ;;  %v327_v4 = vadd.s32 %v326_v61, %v322_v60  ;;  %v317_v6 = vadd.f32 %v316_v3, %v314_v2  ;;  %p827_p13 = pnand %p826_p10, %p822_p6 }
  0x3a   : > { %v734_v37 = vpop.eup %733  ;;  %v444_v58 = vsel %vm369_vm4, %v427_v51, %v421_v50 }
  0x3b   : > { %v736_v41 = vpop.eup %735  ;;  %v286_v42 = vadd.f32 %v734_v37, %v732_v33  ;;  %v445_v59 = vsel %vm371_vm5, %v433_v53, %v444_v58  ;;  %vm328_vm7 = vcmp.lt.s32.totalorder %v327_v4, 256 }
  0x3c   : > { %v738_v46 = vpop.eup %737  ;;  %v446_v63 = vsel %vm373_vm6, %v439_v57, %v445_v59  ;;  %v643_v14 = vsel %vm328_vm7, 1.0, %v925_v0 }
  0x3d   : > { %v287_v49 = vadd.f32 %v736_v41, %v286_v42  ;;  %v448_v1 = vadd.f32 %v646_v62, %v446_v63 }
  0x3f   : > { %v288_v56 = vadd.f32 %v738_v46, %v287_v49  ;;  %647 = vst [vmem:[%s1054_s29 + $0x8] sm:$0xf] %v448_v1 }
  0x41   : > { %739 = vrcp.f32 %v288_v56 }
  0x42   : > { %741 = vlog2.f32 %v288_v56 }
  0x47   : > { %v740_v5 = vpop.eup %739 }
  0x48   : > { %v742_v7 = vpop.eup %741  ;;  %v290_v8 = vmul.f32 %v740_v5, %v288_v56 }
  0x49   : > { %v298_v9 = vmul.f32 0.6931472, %v742_v7 }
  0x4a   : > { %v291_v10 = vsub.f32 2.0, %v290_v8 }
  0x4b   : > { %v318_v11 = vsub.f32 %v298_v9, %v317_v6 }
  0x4c   : > { %v292_v13 = vmul.f32 %v740_v5, %v291_v10 }
  0x4d   : > { %v1096_v15 = vmul.f32 %v643_v14, %v318_v11 }
  0x4e   : > { %v293_v16 = vmul.f32 %v732_v33, %v292_v13  ;;  %v294_v20 = vmul.f32 %v734_v37, %v292_v13  ;;  %v295_v21 = vmul.f32 %v736_v41, %v292_v13  ;;  %v296_v12 = vmul.f32 %v738_v46, %v292_v13  ;;  %v336_v13 = vld [vmem:[%s1054_s29] sm:$0xf] }
  0x4f   : > { %v451_v23 = vrot.slane %v1096_v15, 4 }
  0x50   : > { %v337_v24 = vmul.f32 %v1066_v17, %v293_v16  ;;  %v338_v25 = vmul.f32 %v1069_v18, %v294_v20  ;;  %v339_v26 = vmul.f32 %v1072_v19, %v295_v21  ;;  %v340_v27 = vmul.f32 %v1077_v22, %v296_v12 }
  0x51   : > { %v332_v28 = vmul.f32 %v643_v14, %v293_v16  ;;  %v333_v29 = vmul.f32 %v643_v14, %v294_v20  ;;  %v334_v30 = vmul.f32 %v643_v14, %v295_v21  ;;  %v335_v0 = vmul.f32 %v643_v14, %v296_v12  ;;  %v644_v21 = vld [vmem:[%s1054_s29 + $0x4] sm:$0xf] }
  0x52   : > { %v341_v31 = vrot.slane %v337_v24, 4  ;;  %v347_v32 = vrot.slane %v338_v25, 4  ;;  %v353_v33 = vrot.slane %v339_v26, 4  ;;  %v359_v34 = vrot.slane %v340_v27, 4 }
  0x53   : > { %v380_v35 = vrot.slane %v332_v28, 4  ;;  %v386_v36 = vrot.slane %v333_v29, 4  ;;  %v392_v37 = vrot.slane %v334_v30, 4  ;;  %v398_v38 = vrot.slane %v335_v0, 4 }
  0x54   : > { %v342_v39 = vadd.f32 %v341_v31, %v337_v24  ;;  %v348_v17 = vadd.f32 %v347_v32, %v338_v25  ;;  %v354_v40 = vadd.f32 %v353_v33, %v339_v26  ;;  %v360_v18 = vadd.f32 %v359_v34, %v340_v27 }
  0x55   : > { %v381_v41 = vadd.f32 %v380_v35, %v332_v28  ;;  %v387_v19 = vadd.f32 %v386_v36, %v333_v29  ;;  %v393_v22 = vadd.f32 %v392_v37, %v334_v30  ;;  %v399_v42 = vadd.f32 %v398_v38, %v335_v0  ;;  %v450_v29 = vld [vmem:[%s1050_s23] sm:$0x1] }
  0x56   : > { %v343_v43 = vrot.slane %v342_v39, 2  ;;  %v349_v44 = vrot.slane %v348_v17, 2  ;;  %v355_v45 = vrot.slane %v354_v40, 2  ;;  %v361_v46 = vrot.slane %v360_v18, 2 }
  0x57   : > { %v382_v47 = vrot.slane %v381_v41, 2  ;;  %v388_v48 = vrot.slane %v387_v19, 2  ;;  %v394_v49 = vrot.slane %v393_v22, 2  ;;  %v400_v50 = vrot.slane %v399_v42, 2 }
  0x58   : > { %v344_v51 = vadd.f32 %v343_v43, %v342_v39  ;;  %v350_v52 = vadd.f32 %v349_v44, %v348_v17  ;;  %v356_v53 = vadd.f32 %v355_v45, %v354_v40  ;;  %v362_v54 = vadd.f32 %v361_v46, %v360_v18 }
  0x59   : > { %v383_v55 = vadd.f32 %v382_v47, %v381_v41  ;;  %v389_v56 = vadd.f32 %v388_v48, %v387_v19  ;;  %v395_v57 = vadd.f32 %v394_v49, %v393_v22  ;;  %v401_v58 = vadd.f32 %v400_v50, %v399_v42 }
  0x5a   : > { %v345_v59 = vrot.slane %v344_v51, 1  ;;  %v351_v60 = vrot.slane %v350_v52, 1  ;;  %v357_v61 = vrot.slane %v356_v53, 1  ;;  %v363_v62 = vrot.slane %v362_v54, 1 }
  0x5b   : > { %v384_v63 = vrot.slane %v383_v55, 1  ;;  %v390_v1 = vrot.slane %v389_v56, 1  ;;  %v396_v2 = vrot.slane %v395_v57, 1  ;;  %v402_v3 = vrot.slane %v401_v58, 1 }
  0x5c   : > { %v346_v4 = vadd.f32 %v345_v59, %v344_v51  ;;  %v352_v5 = vadd.f32 %v351_v60, %v350_v52  ;;  %v358_v6 = vadd.f32 %v357_v61, %v356_v53  ;;  %v364_v7 = vadd.f32 %v363_v62, %v362_v54 }
  0x5d   : > { %v385_v8 = vadd.f32 %v384_v63, %v383_v55  ;;  %v391_v9 = vadd.f32 %v390_v1, %v389_v56  ;;  %v397_v10 = vadd.f32 %v396_v2, %v395_v57  ;;  %v403_v11 = vadd.f32 %v402_v3, %v401_v58 }
  0x5e   : > { %v370_v14 = vsel %vm369_vm4, %v352_v5, %v346_v4  ;;  %v452_v16 = vadd.f32 %v451_v23, %v1096_v15 }
  0x5f   : > { %v372_v20 = vsel %vm371_vm5, %v358_v6, %v370_v14  ;;  %v408_v12 = vsel %vm369_vm4, %v391_v9, %v385_v8 }
  0x60   : > { %v374_v24 = vsel %vm373_vm6, %v364_v7, %v372_v20  ;;  %v409_v25 = vsel %vm371_vm5, %v397_v10, %v408_v12  ;;  %v453_v26 = vrot.slane %v452_v16, 2 }
  0x61   : > { %v376_v27 = vadd.f32 %v374_v24, %v336_v13  ;;  %v410_v15 = vsel %vm373_vm6, %v403_v11, %v409_v25 }
  0x62   : > { %v412_v23 = vadd.f32 %v644_v21, %v410_v15  ;;  %v454_v28 = vadd.f32 %v453_v26, %v452_v16 }
  0x63   : > { %377 = vst [vmem:[%s1054_s29] sm:$0xf] %v376_v27 }
  0x64   : > { %645 = vst [vmem:[%s1054_s29 + $0x4] sm:$0xf] %v412_v23  ;;  %v455_v30 = vrot.slane %v454_v28, 1 }
  0x65   : > { %830 = shalt.err (!%p827_p13)
}
  0x66   : > { %s926_s29 = smov 64   ;;  %s927_s7 = smov 4   ;;  %v456_v0 = vadd.f32 %v455_v30, %v454_v28 }
  0x67   : > { %658 = dma.vmem_to_hbm [thread:$0]  (%p999_p9), %s1117_s5, 192, %s479_s6, %s460_s10, %s926_s29, %s926_s29, %s927_s7  }
  0x68   : > { %v457_v31 = vadd.f32 %v456_v0, %v450_v29  ;;  %s465_s9 = scalar_lea.sflag [#allocation9], %s1034_s8  ;;  %s845_s11 = sshra.s32 %s495_s28, 4  ;;  %s846_s11 = int_to_ptr.hbm [resolvable:$true] %s845_s11 }
  0x69   : > { %s847_s19 = scalar_lea.hbm %s846_s11, 1  ;;  %s851_s15 = scalar_lea.hbm %s1180_s3, 2 }
  0x6a   : > { %458 = vst [vmem:[%s1050_s23] sm:$0x1] %v457_v31  ;;  %p848_p0 = scmp.ne.s32.totalorder %s846_s11, %s847_s19  ;;  %p852_p3 = scmp.lt.s32.totalorder %s846_s11, %s1180_s3 }
  0x6b   : > { %p853_p4 = scmp.lt.s32.totalorder %s851_s15, %s847_s19 }
  0x6c   : > { %p849_p1 = pnand %p848_p0, %p999_p9 }
  0x6d   : > { %p854_p5 = por %p853_p4, %p852_p3 }
  0x6e   : > { %p850_p2 = pneg %p849_p1 }
  0x70   : > { %p855_p6 = pnand %p854_p5, %p850_p2 }
  0x72   : > { %858 = shalt.err (!%p855_p6)
}
  0x73   : > { %659 = dma.vmem_to_hbm [thread:$0]  (%p999_p9), %s493_s18, 16, %s495_s28, %s465_s9  }
  0x74 PF: > { %s506_s8 = sand.u32 1, %s901_s12   ;;  %p670_p7 = pnand %p630_p12, %p1006_p11 }
  0x75   : > { %s507_s23 = scalar_lea.sflag [#allocation4], %s506_s8 }
  0x76   : > { %p671_p8 = pneg %p670_p7 }
  0x78   : > { %892 = dma.done.wait (%p671_p8), %s507_s23, 192  }
  0x79   : > { %894 = vsyncadd (%p671_p8), %s507_s23, 4294967104  ;;  %s517_s5 = scalar_lea.sflag [#allocation9], %s506_s8 }
  0x7a   : > { %896 = dma.done.wait (%p671_p8), %s517_s5, 16  }
  0x7b   : > { %898 = vsyncadd (%p671_p8), %s517_s5, 4294967280  ;;  %s26_s17 = sadd.s32 1, %s921_s17   ;;  %s1186_s12 = smov %s905_s13 }
  0x7c   : > { %p23_p10 = scmp.ge.s32.totalorder %s26_s17, 4   ;;  %s1187_s13 = smov %s909_s14 }
  0x7d   : > { %s1188_s14 = smov %s1004_s26  ;;  %s1189_s15 = smov %s917_s16 }
  0x7e   : > { %s1190_s16 = smov %s1192_s20  ;;  %25 = sbr.rel (!%p23_p10) target bundleno = 10 (0xa), region = 109 }
  0x83   :  { %522 = vsyncpa [#allocation3], 1 }
  0x84   :  { %524 = vsyncpa [#allocation3 + $0x1], 1 }
  0x85   :  { %525 = vsyncpa [#allocation6], 1 }
  0x86   :  { %527 = vsyncpa [#allocation6 + $0x1], 1 }
  0x87   :  { %528 = vsyncpa [#allocation4], 1 }
  0x88   :  { %530 = vsyncpa [#allocation4 + $0x1], 1 }
  0x89   :  { %531 = vsyncpa [#allocation9], 1 }
  0x8a   :  { %533 = vsyncpa [#allocation9 + $0x1], 1 }

</bundles_post_ra>
